<compile_context>
chip_gen: v7x
topology: tpu7x:2x2x1
jax: 0.10.0
libtpu: 0.0.40
codegen_flags: <defaults>
</compile_context>

<pallas_src>
import functools

import jax
import jax.numpy as jnp
from jax.experimental import pallas as pl
from jax.experimental.pallas import tpu as pltpu

GAMMA = 1.5
ALPHA = 0.25
LANE = 128
SUBLANE = 8
ALIGN = SUBLANE * LANE  # 1024 elements


def _cdiv(a, b):
    return -(-a // b)


def _round_up(x, m):
    return ((x + m - 1) // m) * m


def _num_tensorcores():
    """TensorCores one Pallas call can use on the local chip (megacore split)."""
    try:
        kind = jax.devices()[0].device_kind.lower()
    except Exception:
        return 1
    # Single-TC chips.
    if any(s in kind for s in ("v5e", "v5 lite", "v5lite", "v6e", "v6 lite",
                               "v6lite", "lite")):
        return 1
    # Dual-TC / megacore chips (v4, v5p, v7x).
    if any(s in kind for s in ("7", "v4", "v5p")):
        return 2
    return 1


def _focal_loss_kernel(pred_ref, true_ref, out_ref, *, gamma, alpha,
                       tile_rows, blocks_per_core, num_blocks, rows,
                       hard_labels):
    c = pl.program_id(0)                 # "parallel" (megacore) axis
    i = pl.program_id(1)                 # "arbitrary" reduction axis
    b = c * blocks_per_core + i          # global block id (may exceed num_blocks)

    @pl.when(i == 0)
    def _():
        out_ref[...] = jnp.zeros_like(out_ref)

    def tile_loss():
        x = pred_ref[...].astype(jnp.float32)
        y = true_ref[...].astype(jnp.float32)
        if hard_labels:
            # y guaranteed in {0,1}: fold the label into the logit sign.
            z = x * (2.0 * y - 1.0)
            e = jnp.exp(-jnp.abs(z))                              # EUP
            bce = jnp.maximum(-z, 0.0) + jnp.log1p(e)             # EUP (log1p)
            d = pl.reciprocal(1.0 + e, approx=True)               # EUP (vrcp)
            q = jnp.where(z >= 0.0, e * d, d)                     # 1 - p_t = sigmoid(-z)
        else:
            # General (soft-label) path, matches the module exactly.
            e = jnp.exp(-jnp.abs(x))                              # EUP
            bce = jnp.maximum(x, 0.0) - x * y + jnp.log1p(e)      # EUP (log1p)
            d = pl.reciprocal(1.0 + e, approx=True)               # EUP (vrcp)
            p = jnp.where(x >= 0.0, d, e * d)                     # sigmoid(x)
            # q = 1 - p_t = y*(1-p) + (1-y)*p = y + p - 2*y*p
            q = jnp.maximum(y + p - 2.0 * (y * p), 0.0)           # clamp: approx rcp
        alpha_factor = (1.0 - alpha) + (2.0 * alpha - 1.0) * y
        if gamma == 1.5:
            modulating_factor = q * jnp.sqrt(q)                   # q**1.5 without pow
        elif gamma == 2.0:
            modulating_factor = q * q
        elif gamma == 1.0:
            modulating_factor = q
        else:
            modulating_factor = jnp.power(q, gamma)
        return bce * alpha_factor * modulating_factor

    def accumulate(loss):
        # Pure-VPU add into the resident (8,128) output block; the cross-lane
        # reduce to a scalar happens once, in XLA, over the tiny partial sums.
        out_ref[...] += loss.reshape(tile_rows // SUBLANE, SUBLANE, LANE).sum(axis=0)

    ragged = (rows % tile_rows) != 0
    last_full = num_blocks - 1 if ragged else num_blocks

    # Hot path: fully-valid blocks, no masking work at all.
    @pl.when(b < last_full)
    def _():
        accumulate(tile_loss())

    if ragged:
        # Only the single boundary block pays for the row mask.  Rows beyond
        # `rows` hold unspecified data; the select zeroes them (NaN-safe).
        @pl.when(b == num_blocks - 1)
        def _():
            valid = rows - (num_blocks - 1) * tile_rows           # static int
            row = jax.lax.broadcasted_iota(jnp.int32, (tile_rows, LANE), 0)
            accumulate(jnp.where(row < valid, tile_loss(), 0.0))


def focal_loss(pred, true, *, gamma=GAMMA, alpha=ALPHA, tile_rows=4096,
               hard_labels=False, reduction="mean"):
    """pred/true: tensors of identical shape (any rank). Returns scalar f32."""
    assert pred.shape == true.shape
    total = pred.size

    # reshape(-1) of a contiguous array is free (bitcast), no copy.
    pred_flat = pred.reshape(-1)
    true_flat = true.reshape(-1)

    rem = total % ALIGN
    if rem:
        # Tiny sentinel pad (< 1024 elems) so the lane-dense (rows,128) slab
        # with 8-aligned rows is legal.  pred=-100, true=0 gives exactly zero
        # focal loss in f32, so no in-kernel element mask is needed.
        # TODO(synk): XLA still copies the flat tensor here; detection-head
        # tensors are normally 1024-aligned so this path is rarely taken.
        pad = ALIGN - rem
        pred_flat = jnp.pad(pred_flat, (0, pad), constant_values=-100.0)
        true_flat = jnp.pad(true_flat, (0, pad), constant_values=0)

    rows = pred_flat.size // LANE                      # multiple of 8
    pred2d = pred_flat.reshape(rows, LANE)
    true2d = true_flat.reshape(rows, LANE)

    num_cores = _num_tensorcores()
    # Large tiles to amortise the ~0.35us per-grid-step cost; shrink for small
    # inputs so both cores get work.  Always a multiple of 8 and <= rows.
    tile_rows = max(SUBLANE,
                    min(_round_up(tile_rows, SUBLANE),
                        _round_up(_cdiv(rows, num_cores), SUBLANE)))
    num_blocks = _cdiv(rows, tile_rows)
    blocks_per_core = _cdiv(num_blocks, num_cores)

    def in_index_map(c, i):
        # Contiguous per-core block ranges (good DMA locality).  Clamp the
        # (at most one) surplus iteration on the smaller core to an in-bounds
        # block; its contribution is gated off inside the kernel.
        return (jnp.minimum(c * blocks_per_core + i, num_blocks - 1), 0)

    kernel = functools.partial(
        _focal_loss_kernel, gamma=gamma, alpha=alpha, tile_rows=tile_rows,
        blocks_per_core=blocks_per_core, num_blocks=num_blocks, rows=rows,
        hard_labels=hard_labels)

    partials = pl.pallas_call(
        kernel,
        out_shape=jax.ShapeDtypeStruct((num_cores * SUBLANE, LANE), jnp.float32),
        grid_spec=pltpu.PrefetchScalarGridSpec(
            num_scalar_prefetch=0,
            grid=(num_cores, blocks_per_core),
            in_specs=[
                pl.BlockSpec((tile_rows, LANE), in_index_map),
                pl.BlockSpec((tile_rows, LANE), in_index_map),
            ],
            # Output block index depends only on the core axis -> resident
            # across the reduction axis; it IS the accumulator (no scratch).
            out_specs=pl.BlockSpec((SUBLANE, LANE), lambda c, i: (c, 0)),
        ),
        compiler_params=pltpu.CompilerParams(
            dimension_semantics=("parallel", "arbitrary"),
        ),
    )(pred2d, true2d)

    total_sum = jnp.sum(partials, dtype=jnp.float32)
    if reduction == "mean":
        return total_sum / total
    elif reduction == "sum":
        return total_sum
    # TODO(synk): reduction='none' (full elementwise output) not implemented;
    # BCEWithLogitsLoss defaults to 'mean', which is what FocalLoss uses here.
    raise ValueError(f"unsupported reduction: {reduction}")


def _focal_loss_ref(pred, true, gamma=GAMMA, alpha=ALPHA):
    x = pred.astype(jnp.float32)
    y = true.astype(jnp.float32)
    bce = jnp.maximum(x, 0.0) - x * y + jnp.log1p(jnp.exp(-jnp.abs(x)))
    p = jax.nn.sigmoid(x)
    p_t = y * p + (1 - y) * (1 - p)
    af = y * alpha + (1 - y) * (1 - alpha)
    return jnp.mean(bce * af * (1.0 - p_t) ** gamma)


if __name__ == "__main__":
    key = jax.random.PRNGKey(0)
    k1, k2, k3, k4 = jax.random.split(key, 4)

    # Primary, module-consistent shapes: NCHW logits + binary targets.
    B, C, H, W = 2, 4, 16, 16
    pred = jax.random.normal(k1, (B, C, H, W), dtype=jnp.float32) * 2.0
    # Binary targets as bf16: exact for {0,1}, halves their HBM traffic.
    true = (jax.random.uniform(k2, (B, C, H, W)) > 0.5).astype(jnp.bfloat16)

    loss = focal_loss(pred, true)                       # general (soft-label) path
    loss_hard = focal_loss(pred, true, hard_labels=True)
    jax.block_until_ready((loss, loss_hard))

    ref = _focal_loss_ref(pred, true)
    # Slightly relaxed tolerance: kernel uses the EUP approximate reciprocal.
    assert jnp.allclose(loss, ref, rtol=5e-3, atol=1e-5), (loss, ref)
    assert jnp.allclose(loss_hard, ref, rtol=5e-3, atol=1e-5), (loss_hard, ref)

    # Exercise the ragged-last-block path (rows=24, tile_rows=16).
    p2 = jax.random.normal(k3, (2, 3, 16, 32), dtype=jnp.float32)
    t2 = (jax.random.uniform(k4, (2, 3, 16, 32)) > 0.5).astype(jnp.float32)
    l2 = focal_loss(p2, t2, tile_rows=16)
    assert jnp.allclose(l2, _focal_loss_ref(p2, t2), rtol=5e-3, atol=1e-5), l2

    # Exercise the unaligned-total (tiny sentinel pad) path.
    p3 = jax.random.normal(k1, (3, 5, 7, 11), dtype=jnp.float32)
    t3 = (jax.random.uniform(k2, (3, 5, 7, 11)) > 0.5).astype(jnp.float32)
    l3 = focal_loss(p3, t3)
    assert jnp.allclose(l3, _focal_loss_ref(p3, t3), rtol=5e-3, atol=1e-5), l3

    print("KERNEL_OK")
</pallas_src>

<mosaic_0001>
module attributes {stable_mosaic.version = 11 : i64} {
  func.func @_focal_loss_kernel(%arg0: i32, %arg1: i32, %arg2: memref<16x128xf32, #tpu.memory_space<vmem>>, %arg3: memref<16x128xbf16, #tpu.memory_space<vmem>>, %arg4: memref<8x128xf32, #tpu.memory_space<vmem>>) attributes {dimension_semantics = [#tpu.dimension_semantics<parallel>, #tpu.dimension_semantics<arbitrary>], iteration_bounds = array<i64: 1, 1>, scalar_prefetch = 0 : i64, scratch_operands = 0 : i64, tpu.core_type = #tpu.core_type<tc>, window_params = [{transform_indices = @transform_0, window_bounds = array<i64: 16, 128>}, {transform_indices = @transform_1, window_bounds = array<i64: 16, 128>}, {transform_indices = @transform_2, window_bounds = array<i64: 8, 128>}]} {
    %c1_i32 = arith.constant 1 : i32
    %0 = arith.muli %arg0, %c1_i32 : i32
    %1 = arith.addi %0, %arg1 : i32
    %c0_i32 = arith.constant 0 : i32
    %2 = arith.cmpi eq, %arg1, %c0_i32 : i32
    %3 = arith.extui %2 : i1 to i32
    %c0_i32_0 = arith.constant 0 : i32
    %4 = arith.cmpi ne, %3, %c0_i32_0 : i32
    scf.if %4 {
      %cst = arith.constant 0.000000e+00 : f32
      %8 = vector.broadcast %cst : f32 to vector<8x128xf32>
      %c0 = arith.constant 0 : index
      %c0_3 = arith.constant 0 : index
      %9 = vector.load %arg4[%c0, %c0_3] : memref<8x128xf32, #tpu.memory_space<vmem>>, vector<8x128xf32>
      tpu.vector_store %arg4[%c0, %c0_3], %8 {strides = array<i32>} : memref<8x128xf32, #tpu.memory_space<vmem>>, vector<8x128xf32>,
    } else {
    }
    %c1_i32_1 = arith.constant 1 : i32
    %5 = arith.cmpi slt, %1, %c1_i32_1 : i32
    %6 = arith.extui %5 : i1 to i32
    %c0_i32_2 = arith.constant 0 : i32
    %7 = arith.cmpi ne, %6, %c0_i32_2 : i32
    scf.if %7 {
      %c0 = arith.constant 0 : index
      %c0_3 = arith.constant 0 : index
      %8 = vector.load %arg2[%c0, %c0_3] : memref<16x128xf32, #tpu.memory_space<vmem>>, vector<16x128xf32>
      %c0_4 = arith.constant 0 : index
      %c0_5 = arith.constant 0 : index
      %9 = vector.load %arg3[%c0_4, %c0_5] : memref<16x128xbf16, #tpu.memory_space<vmem>>, vector<16x128xbf16>
      %10 = arith.extf %9 : vector<16x128xbf16> to vector<16x128xf32>
      %11 = math.absf %8 : vector<16x128xf32>
      %cst = arith.constant 0.000000e+00 : f32
      %12 = vector.broadcast %cst : f32 to vector<16x128xf32>
      %13 = arith.subf %12, %11 : vector<16x128xf32>
      %14 = math.exp %13 : vector<16x128xf32>
      %cst_6 = arith.constant 0.000000e+00 : f32
      %15 = vector.broadcast %cst_6 : f32 to vector<16x128xf32>
      %16 = arith.maximumf %8, %15 : vector<16x128xf32>
      %17 = arith.mulf %8, %10 : vector<16x128xf32>
      %18 = arith.subf %16, %17 : vector<16x128xf32>
      %19 = math.log1p %14 : vector<16x128xf32>
      %20 = arith.addf %18, %19 : vector<16x128xf32>
      %cst_7 = arith.constant 1.000000e+00 : f32
      %21 = vector.broadcast %cst_7 : f32 to vector<16x128xf32>
      %22 = arith.addf %21, %14 : vector<16x128xf32>
      %23 = tpu.reciprocal %22 {approx = true} : vector<16x128xf32> -> vector<16x128xf32>
      %cst_8 = arith.constant 0.000000e+00 : f32
      %24 = vector.broadcast %cst_8 : f32 to vector<16x128xf32>
      %25 = arith.cmpf oge, %8, %24 : vector<16x128xf32>
      %26 = arith.mulf %14, %23 : vector<16x128xf32>
      %27 = arith.select %25, %23, %26 : vector<16x128xi1>, vector<16x128xf32>
      %28 = arith.addf %10, %27 : vector<16x128xf32>
      %29 = arith.mulf %10, %27 : vector<16x128xf32>
      %cst_9 = arith.constant 2.000000e+00 : f32
      %30 = vector.broadcast %cst_9 : f32 to vector<16x128xf32>
      %31 = arith.mulf %30, %29 : vector<16x128xf32>
      %32 = arith.subf %28, %31 : vector<16x128xf32>
      %cst_10 = arith.constant 0.000000e+00 : f32
      %33 = vector.broadcast %cst_10 : f32 to vector<16x128xf32>
      %34 = arith.maximumf %32, %33 : vector<16x128xf32>
      %cst_11 = arith.constant -5.000000e-01 : f32
      %35 = vector.broadcast %cst_11 : f32 to vector<16x128xf32>
      %36 = arith.mulf %35, %10 : vector<16x128xf32>
      %cst_12 = arith.constant 7.500000e-01 : f32
      %37 = vector.broadcast %cst_12 : f32 to vector<16x128xf32>
      %38 = arith.addf %37, %36 : vector<16x128xf32>
      %39 = math.sqrt %34 : vector<16x128xf32>
      %40 = arith.mulf %34, %39 : vector<16x128xf32>
      %41 = arith.mulf %20, %38 : vector<16x128xf32>
      %42 = arith.mulf %41, %40 : vector<16x128xf32>
      %c0_13 = arith.constant 0 : index
      %c0_14 = arith.constant 0 : index
      %43 = vector.load %arg4[%c0_13, %c0_14] : memref<8x128xf32, #tpu.memory_space<vmem>>, vector<8x128xf32>
      %44 = vector.shape_cast %42 : vector<16x128xf32> to vector<2x8x128xf32>
      %cst_15 = arith.constant dense<0.000000e+00> : vector<8x128xf32>
      %45 = vector.multi_reduction <add>, %44, %cst_15 [0] : vector<2x8x128xf32> to vector<8x128xf32>
      %46 = arith.addf %43, %45 : vector<8x128xf32>
      %c0_16 = arith.constant 0 : index
      %c0_17 = arith.constant 0 : index
      %47 = vector.load %arg4[%c0_16, %c0_17] : memref<8x128xf32, #tpu.memory_space<vmem>>, vector<8x128xf32>
      tpu.vector_store %arg4[%c0_16, %c0_17], %46 {strides = array<i32>} : memref<8x128xf32, #tpu.memory_space<vmem>>, vector<8x128xf32>,
    } else {
    }
    return
  }
  func.func @transform_0(%arg0: i32, %arg1: i32) -> (i32, i32) {
    %c1_i32 = arith.constant 1 : i32
    %0 = arith.muli %arg0, %c1_i32 : i32
    %1 = arith.addi %0, %arg1 : i32
    %c0_i32 = arith.constant 0 : i32
    %2 = arith.minsi %1, %c0_i32 : i32
    %c0_i32_0 = arith.constant 0 : i32
    %c0_i32_1 = arith.constant 0 : i32
    return %2, %c0_i32_0 : i32, i32
  }
  func.func @transform_1(%arg0: i32, %arg1: i32) -> (i32, i32) {
    %c1_i32 = arith.constant 1 : i32
    %0 = arith.muli %arg0, %c1_i32 : i32
    %1 = arith.addi %0, %arg1 : i32
    %c0_i32 = arith.constant 0 : i32
    %2 = arith.minsi %1, %c0_i32 : i32
    %c0_i32_0 = arith.constant 0 : i32
    %c0_i32_1 = arith.constant 0 : i32
    return %2, %c0_i32_0 : i32, i32
  }
  func.func @transform_2(%arg0: i32, %arg1: i32) -> (i32, i32) {
    %c0_i32 = arith.constant 0 : i32
    %c0_i32_0 = arith.constant 0 : i32
    return %arg0, %c0_i32 : i32, i32
  }
}

</mosaic_0001>

<bundles_post_ra>
// kernel: tpu_custom_call.1
= control target key start
LH: loop header
LB: loop body
LE: loop exit
PB: predicated region body
PF: predicated region fallthrough
CT: control target
= control target key end

     0   :  { %7 = vsyncpa [#allocation3], 0  ;;  %s336_s0 = inlined_call_operand.hbm [shape: f32[16,128], index: 0, kind: input, shape index: {}]   ;;  %s337_s1 = inlined_call_operand.hbm [shape: bf16[16,128], index: 1, kind: input, shape index: {}]   ;;  %s338_s2 = inlined_call_operand.hbm [shape: f32[8,128], index: 2, kind: output, shape index: {}]  }
   0x1   :  { %8 = vsyncpa [#allocation6], 0 }
   0x2   :  { %9 = vsyncpa [#allocation4], 0  ;;  %s278_s9 = smov [#allocation2]   ;;  %s206_s13 = scalar_lea.hbm %s336_s0, 256 }
   0x3   :  { %s21_s10 = sshll.u32 %s278_s9, 4  ;;  %p207_p0 = scmp.ne.s32.totalorder %s336_s0, %s206_s13  ;;  %s22_s10 = int_to_ptr.vmem [resolvable:$true] %s21_s10 }
   0x4   :  { %p210_p1 = scmp.lt.u32.totalorder %s206_s13, %s336_s0 }
   0x6   :  { %p212_p2 = pnand %p210_p1, %p207_p0 }
   0x8   :  { %215 = shalt.err (!%p212_p2)
}
   0x9   :  { %s216_s18 = scalar_lea.vmem %s22_s10, 256  ;;  %p221_p4 = scmp.lt.s32.totalorder %s22_s10, %s22_s10 }
   0xa   :  { %p217_p3 = scmp.ne.s32.totalorder %s22_s10, %s216_s18  ;;  %p222_p5 = scmp.lt.s32.totalorder %s216_s18, %s216_s18 }
   0xc   :  { %p223_p6 = por %p222_p5, %p221_p4 }
   0xe   :  { %p224_p7 = pnand %p223_p6, %p217_p3 }
  0x10   :  { %227 = shalt.err (!%p224_p7)
}
  0x11   :  { %s279_s19 = smov 128   ;;  %s280_s20 = smov 8  }
  0x12   :  { %27 = dma.hbm_to_vmem [thread:$0]  %s336_s0, 256, %s22_s10, [#allocation3], %s279_s19, %s279_s19, %s280_s20  }
  0x13   :  { %s281_s23 = smov [#allocation5]   ;;  %s228_s27 = scalar_lea.hbm %s337_s1, 128 }
  0x14   :  { %s39_s24 = sshll.u32 %s281_s23, 4  ;;  %p229_p8 = scmp.ne.s32.totalorder %s337_s1, %s228_s27  ;;  %s40_s24 = int_to_ptr.vmem [resolvable:$true] %s39_s24 }
  0x15   :  { %p232_p9 = scmp.lt.u32.totalorder %s228_s27, %s337_s1 }
  0x17   :  { %p234_p10 = pnand %p232_p9, %p229_p8 }
  0x19   :  { %237 = shalt.err (!%p234_p10)
}
  0x1a   :  { %s238_s4 = scalar_lea.vmem %s40_s24, 128  ;;  %p243_p12 = scmp.lt.s32.totalorder %s40_s24, %s40_s24 }
  0x1b   :  { %p239_p11 = scmp.ne.s32.totalorder %s40_s24, %s238_s4  ;;  %p244_p13 = scmp.lt.s32.totalorder %s238_s4, %s238_s4 }
  0x1d   :  { %p245_p0 = por %p244_p13, %p243_p12 }
  0x1f   :  { %p246_p1 = pnand %p245_p0, %p239_p11 }
  0x21   :  { %249 = shalt.err (!%p246_p1)
}
  0x22   :  { %s282_s0 = smov 64   ;;  %s283_s5 = smov 4  }
  0x23   :  { %45 = dma.hbm_to_vmem [thread:$0]  %s337_s1, 128, %s40_s24, [#allocation6], %s282_s0, %s282_s0, %s283_s5  }
  0x24   :  { %272 = dma.done.wait [#allocation3], 256  }
  0x25   :  { %273 = vsyncadd [#allocation3], 4294967040 }
  0x26   :  { %274 = dma.done.wait [#allocation6], 128  }
  0x27   :  { %275 = vsyncadd [#allocation6], 4294967168  ;;  %v70_v0 = vld [vmem:[#allocation2] sm:$0xff]  ;;  %v71_v1 = vld [vmem:[#allocation2 + $0x8] sm:$0xff]  ;;  %s284_s1 = smov [#allocation7]  }
  0x28   :  { %v76_v2 = vand.u32 2147483647, %v70_v0  ;;  %v77_v3 = vand.u32 2147483647, %v71_v1  ;;  %v179_v12 = vld [vmem:[#allocation5] sm:$0xff]   ;;  %vm114_vm0 = vcmp.ge.f32.partialorder %v70_v0, 0.0 }
  0x29   :  { %v180_v14 = vunpack.c.l.bf16 %v179_v12  ;;  %v181_v16 = vunpack.c.h.bf16 %v179_v12  ;;  %vm115_vm1 = vcmp.ge.f32.partialorder %v71_v1, 0.0  ;;  %v84_v39 = vmax.f32 %v70_v0, 0.0  ;;  %s164_s8 = sshll.u32 %s284_s1, 4  ;;  %s165_s8 = int_to_ptr.vmem [resolvable:$true] %s164_s8 }
  0x2a   :  { %v78_v4 = vsub.f32 0.0, %v76_v2  ;;  %v79_v5 = vsub.f32 0.0, %v77_v3  ;;  %v85_v41 = vmax.f32 %v71_v1, 0.0  ;;  %s250_s9 = scalar_lea.vmem %s165_s8, 128  ;;  %p255_p3 = scmp.lt.s32.totalorder %s165_s8, %s165_s8 }
  0x2b   :  { %v86_v40 = vmul.f32 %v180_v14, %v70_v0  ;;  %v87_v42 = vmul.f32 %v181_v16, %v71_v1  ;;  %v130_v48 = vmul.f32 -0.5, %v180_v14  ;;  %v131_v51 = vmul.f32 -0.5, %v181_v16  ;;  %p251_p2 = scmp.ne.s32.totalorder %s165_s8, %s250_s9  ;;  %p256_p4 = scmp.lt.s32.totalorder %s250_s9, %s250_s9 }
  0x2c   :  { %v80_v6 = vmul.f32 1.442695, %v78_v4  ;;  %v82_v7 = vmul.f32 1.442695, %v79_v5 }
  0x2d   :  { %v88_v47 = vsub.f32 %v84_v39, %v86_v40  ;;  %v89_v49 = vsub.f32 %v85_v41, %v87_v42  ;;  %v132_v54 = vadd.f32 0.75, %v130_v48  ;;  %v133_v57 = vadd.f32 0.75, %v131_v51  ;;  %p257_p5 = por %p256_p4, %p255_p3 }
  0x2e   :  { %190 = vpow2.f32 %v80_v6 }
  0x2f   :  { %192 = vpow2.f32 %v82_v7  ;;  %p258_p6 = pnand %p257_p5, %p251_p2 }
  0x38   :  { %v191_v8 = vpop.eup %190 }
  0x39   :  { %v193_v9 = vpop.eup %192  ;;  %v90_v10 = vadd.f32 1.0, %v191_v8  ;;  %v93_v25 = vmul.f32 -0.5, %v191_v8  ;;  %v96_v34 = vand.u32 2147483647, %v191_v8 }
  0x3a   :  { %v99_v11 = vadd.f32 1.0, %v193_v9  ;;  %v102_v27 = vmul.f32 -0.5, %v193_v9  ;;  %v105_v38 = vand.u32 2147483647, %v193_v9 }
  0x3b   :  { %194 = vrcp.f32 %v90_v10  ;;  %v94_v31 = vadd.f32 1.0, %v93_v25  ;;  %vm97_vm2 = vcmp.lt.f32.partialorder %v96_v34, 0.0004427343 }
  0x3c   :  { %196 = vrcp.f32 %v99_v11  ;;  %v103_v35 = vadd.f32 1.0, %v102_v27  ;;  %vm106_vm3 = vcmp.lt.f32.partialorder %v105_v38, 0.0004427343 }
  0x3d   :  { %198 = vlog2.f32 %v90_v10  ;;  %v95_v44 = vmul.f32 %v191_v8, %v94_v31 }
  0x3e   :  { %200 = vlog2.f32 %v99_v11  ;;  %v104_v46 = vmul.f32 %v193_v9, %v103_v35 }
  0x45   :  { %v195_v13 = vpop.eup %194 }
  0x46   :  { %v197_v15 = vpop.eup %196  ;;  %v116_v17 = vmul.f32 %v195_v13, %v191_v8 }
  0x47   :  { %v117_v18 = vmul.f32 %v197_v15, %v193_v9  ;;  %v199_v33 = vpop.eup %198 }
  0x48   :  { %v118_v19 = vsel %vm114_vm0, %v195_v13, %v116_v17  ;;  %v201_v37 = vpop.eup %200  ;;  %v92_v43 = vmul.f32 0.6931472, %v199_v33 }
  0x49   :  { %v119_v20 = vsel %vm115_vm1, %v197_v15, %v117_v18  ;;  %v120_v21 = vadd.f32 %v180_v14, %v118_v19  ;;  %v122_v22 = vmul.f32 %v180_v14, %v118_v19  ;;  %v101_v45 = vmul.f32 0.6931472, %v201_v37 }
  0x4a   :  { %v121_v23 = vadd.f32 %v181_v16, %v119_v20  ;;  %v123_v24 = vmul.f32 %v181_v16, %v119_v20  ;;  %v98_v50 = vsel %vm97_vm2, %v95_v44, %v92_v43 }
  0x4b   :  { %v124_v26 = vmul.f32 2.0, %v122_v22  ;;  %v107_v52 = vsel %vm106_vm3, %v104_v46, %v101_v45  ;;  %v108_v53 = vadd.f32 %v98_v50, %v88_v47 }
  0x4c   :  { %v125_v28 = vmul.f32 2.0, %v123_v24  ;;  %v109_v56 = vadd.f32 %v107_v52, %v89_v49 }
  0x4d   :  { %v126_v29 = vsub.f32 %v120_v21, %v124_v26  ;;  %v150_v0 = vmul.f32 %v132_v54, %v108_v53 }
  0x4e   :  { %v127_v30 = vsub.f32 %v121_v23, %v125_v28  ;;  %v151_v3 = vmul.f32 %v133_v57, %v109_v56 }
  0x4f   :  { %v128_v32 = vmax.f32 %v126_v29, 0.0 }
  0x50   :  { %v129_v36 = vmax.f32 %v127_v30, 0.0 }
  0x51   :  { %202 = vrsqrt.f32 %v128_v32  ;;  %vm136_vm4 = vcmp.eq.f32.partialorder %v128_v32, inf  ;;  %v139_v58 = vand.u32 2147483648, %v128_v32  ;;  %vm138_vm5 = vcmp.eq.f32.partialorder %v128_v32, 0.0 }
  0x52   :  { %204 = vrsqrt.f32 %v129_v36  ;;  %vm143_vm6 = vcmp.eq.f32.partialorder %v129_v36, inf  ;;  %v146_v61 = vand.u32 2147483648, %v129_v36  ;;  %vm145_vm7 = vcmp.eq.f32.partialorder %v129_v36, 0.0 }
  0x5b   :  { %v203_v55 = vpop.eup %202 }
  0x5c   :  { %v205_v59 = vpop.eup %204  ;;  %v135_v60 = vmul.f32 %v203_v55, %v128_v32 }
  0x5d   :  { %v142_v62 = vmul.f32 %v205_v59, %v129_v36 }
  0x5e   :  { %v137_v63 = vsel %vm136_vm4, %v128_v32, %v135_v60 }
  0x5f   :  { %v140_v1 = vsel %vm138_vm5, %v139_v58, %v137_v63  ;;  %v144_v2 = vsel %vm143_vm6, %v129_v36, %v142_v62 }
  0x60   :  { %v147_v4 = vsel %vm145_vm7, %v146_v61, %v144_v2  ;;  %v148_v5 = vmul.f32 %v140_v1, %v128_v32 }
  0x61   :  { %v149_v6 = vmul.f32 %v147_v4, %v129_v36 }
  0x62   :  { %v152_v7 = vmul.f32 %v150_v0, %v148_v5 }
  0x63   :  { %v153_v8 = vmul.f32 %v151_v3, %v149_v6 }
  0x65   :  { %v155_v9 = vadd.f32 %v153_v8, %v152_v7 }
  0x67   :  { %157 = vst [vmem:[#allocation7] sm:$0xff] %v155_v9 }
  0x68   :  { %261 = shalt.err (!%p258_p6)
}
  0x69   :  { %s262_s12 = scalar_lea.hbm %s338_s2, 128 }
  0x6a   :  { %p263_p7 = scmp.ne.s32.totalorder %s338_s2, %s262_s12  ;;  %p266_p8 = scmp.lt.u32.totalorder %s262_s12, %s338_s2 }
  0x6c   :  { %p268_p9 = pnand %p266_p8, %p263_p7 }
  0x6e   :  { %271 = shalt.err (!%p268_p9)
}
  0x6f   :  { %167 = dma.vmem_to_hbm [thread:$0]  %s165_s8, 128, %s338_s2, [#allocation4]  }
  0x70   :  { %276 = dma.done.wait [#allocation4], 128  }
  0x71   :  { %277 = vsyncadd [#allocation4], 4294967168 }
  0x72   :  { %171 = vsyncpa [#allocation3], 1 }
  0x73   :  { %172 = vsyncpa [#allocation6], 1 }
  0x74   :  { %173 = vsyncpa [#allocation4], 1 }

</bundles_post_ra>
